<compile_context>
chip_gen: v7x
topology: tpu7x:2x2x1
jax: 0.10.0
libtpu: 0.0.40
codegen_flags: <defaults>
</compile_context>

<pallas_src>
import jax
import jax.numpy as jnp
from jax.experimental import pallas as pl
from jax.experimental.pallas import tpu as pltpu

_LANES = 128
_SUBLANES = 8
_PALLAS_MIN_ELEMENTS = 1 << 14   # below this, launch overhead beats the kernel
_MAX_TILE_ROWS = 8192


def _cdiv(a, b):
    return -(-a // b)


def _sublane_multiple(dtype):
    """Rows per packed sublane group: 8 for f32, 16 for bf16, 32 for int8/fp8."""
    itemsize = jnp.dtype(dtype).itemsize
    return _SUBLANES * max(1, 4 // max(1, itemsize))


def _is_v7x():
    try:
        kind = jax.devices()[0].device_kind.lower()
        return ("v7" in kind) or ("7x" in kind)
    except Exception:
        return False


def _num_tensorcores():
    # TensorCores per chip a "parallel" grid axis can be sharded across:
    # v5e/v6e have 1, v7x has 2.
    return 2 if _is_v7x() else 1


def _vmem_limit_bytes():
    cap = 64 * 1024 * 1024
    try:
        cap = int(pltpu.get_tpu_info().vmem_capacity_bytes)
    except Exception:
        pass
    if _is_v7x():
        cap = min(cap, 64 * 1024 * 1024)   # v7x: 64 MiB physical per TC
    # ~75% of physical, capped: v7x -> 48 MiB, v5e/v6e (128 MiB) -> ~96 MiB.
    return min(cap * 3 // 4, 100 * 1024 * 1024)


def _choose_tile_n(n, c, dtype, vmem_limit):
    """Rows per tile: biggest tile whose footprint (2x double-buffered input DMA
    copies + ~3 f32-sized in-kernel intermediates: cast copy, shifted, exp) stays
    comfortably inside the generation's scoped-VMEM limit."""
    itemsize = jnp.dtype(dtype).itemsize
    sub = _sublane_multiple(dtype)
    per_row_bytes = c * (2 * itemsize + 3 * 4)
    rows = (vmem_limit * 3 // 5) // max(1, per_row_bytes)   # ~40% headroom
    rows = min(rows, _MAX_TILE_ROWS)
    rows = (rows // sub) * sub
    rows = max(sub, rows)
    if rows >= n:
        return n  # single full block (block dim == full array dim is always legal)
    return rows
    # TODO(synk): class-axis (flash-style online logsumexp) tiling for LM-head-scale
    # vocabularies so the per-tile footprint becomes C-independent.


def _make_lse_kernel(n_rows, tile_n, tiles_per_shard):
    def kernel(logits_ref, out_ref):
        shard = pl.program_id(0)
        t = pl.program_id(1)

        # Resident per-shard accumulator (same out block across the reduction axis).
        @pl.when(t == 0)
        def _():
            out_ref[...] = jnp.zeros_like(out_ref)

        tile_idx = shard * tiles_per_shard + t

        # The clamped "replay" tile of the last shard (odd tile count on the 2-TC
        # split) pays only its DMA; compute is skipped.
        @pl.when(tile_idx * tile_n < n_rows)
        def _():
            logits = logits_ref[...].astype(jnp.float32)   # (tile_n, C) f32 math
            tn = logits.shape[0]

            # Numerically stable per-row logsumexp.
            row_max = jnp.max(logits, axis=-1, keepdims=True)
            lse = row_max + jnp.log(
                jnp.sum(jnp.exp(logits - row_max), axis=-1, keepdims=True))

            # Mask padded tail rows (global row id >= N). jnp.where is a select,
            # so NaN/Inf produced from unspecified padded VMEM contents are safe.
            row_ids = tile_idx * tile_n + jax.lax.broadcasted_iota(
                jnp.int32, (tn, 1), 0)
            lse = jnp.where(row_ids < n_rows, lse, 0.0)

            # TODO(synk): sequential scalar accumulation across tiles; a pairwise
            # second level would tighten the running-sum error for huge N.
            out_ref[...] += jnp.sum(lse)

    return kernel


def cross_entropy(outputs, labels, reduction="mean", force_pallas=False):
    """Pallas equivalent of torch.nn.functional.cross_entropy(outputs, labels).

    outputs: float logits of shape (N, C); labels: int class ids of shape (N,).
    """
    if reduction not in ("mean", "sum"):
        # TODO(synk): 'none' reduction, weight, label_smoothing and ignore_index
        # of F.cross_entropy are not wired through the kernel.
        raise NotImplementedError("only reduction='mean'/'sum' is implemented")

    n, c = outputs.shape
    labels2d = labels.reshape(n, 1).astype(jnp.int32)

    # Label gather touches only N elements -> do it (and its sum) in plain XLA so
    # the kernel streams nothing but the (N, C) logits.
    # TODO(synk): out-of-range / negative labels (e.g. torch ignore_index=-100) are
    # not validated and silently contribute their gathered logit.
    picked_sum = jnp.sum(
        jnp.take_along_axis(outputs, labels2d, axis=-1).astype(jnp.float32))

    # Tiny problems or lane-sparse class dims (< 128): plain XLA fusion beats
    # pallas_call launch/step overhead and avoids wasting 128/C of every vreg/DMA.
    if not force_pallas and (n * c < _PALLAS_MIN_ELEMENTS or c < _LANES):
        # TODO(synk): alternatively fold rows into lanes (reshape (N,C)->(N/k,k*C))
        # for small C instead of falling back to XLA.
        lse = jax.scipy.special.logsumexp(outputs.astype(jnp.float32), axis=-1)
        total = jnp.sum(lse) - picked_sum
        return total * (1.0 / n) if reduction == "mean" else total

    vmem_limit = _vmem_limit_bytes()
    tile_n = _choose_tile_n(n, c, outputs.dtype, vmem_limit)
    num_tiles = _cdiv(n, tile_n)
    num_shards = min(_num_tensorcores(), num_tiles)   # 2 only on v7x
    tiles_per_shard = _cdiv(num_tiles, num_shards)

    def in_idx(s, t):
        # Clamp so the extra logical tile of the last shard stays in bounds;
        # its compute is skipped inside the kernel.
        return (jnp.minimum(s * tiles_per_shard + t, num_tiles - 1), 0)

    partials = pl.pallas_call(
        _make_lse_kernel(n, tile_n, tiles_per_shard),
        out_shape=jax.ShapeDtypeStruct((num_shards, _SUBLANES, _LANES), jnp.float32),
        grid=(num_shards, tiles_per_shard),
        in_specs=[
            # Logits DMA'd in their input dtype (bf16 stays bf16 on the wire).
            # TODO(synk): sweep pipeline_mode=pl.Buffered(3) on v7x if a profile
            # shows exposed DMA between steps.
            pl.BlockSpec((tile_n, c), in_idx),
        ],
        out_specs=pl.BlockSpec((1, _SUBLANES, _LANES), lambda s, t: (s, 0, 0)),
        compiler_params=pltpu.CompilerParams(
            dimension_semantics=("parallel", "arbitrary"),
            vmem_limit_bytes=vmem_limit,
        ),
    )(outputs)

    total = jnp.sum(partials[:, 0, 0]) - picked_sum
    if reduction == "mean":
        return total * (1.0 / n)   # precomputed reciprocal of the true N
    return total


class _PallasFunctional:
    """Stand-in for the `package` argument (torch.nn.functional)."""
    cross_entropy = staticmethod(cross_entropy)


class Loss:
    """JAX/Pallas mirror of AIDE's Loss wrapper."""

    def __init__(self, package, configuration):
        self.configuration = configuration
        self.loss = getattr(package, configuration["type"])

    def __call__(self, outputs, labels):
        return self.loss(outputs, labels, **self.configuration["params"])


if __name__ == "__main__":
    key = jax.random.PRNGKey(0)
    k1, k2, k3, k4, k5, k6 = jax.random.split(key, 6)

    criterion = Loss(
        _PallasFunctional,
        {"type": "cross_entropy",
         "params": {"reduction": "mean", "force_pallas": True}},
    )

    # Small demo shape (batch=8, classes=32) routed through the Pallas kernel.
    N, C = 8, 32
    logits = jax.random.normal(k1, (N, C), dtype=jnp.float32)
    labels = jax.random.randint(k2, (N,), 0, C, dtype=jnp.int32)
    loss_small = jax.block_until_ready(criterion(logits, labels))
    lse = jax.scipy.special.logsumexp(logits, axis=-1)
    ref_small = jnp.mean(lse - logits[jnp.arange(N), labels])
    assert jnp.allclose(loss_small, ref_small, atol=1e-5, rtol=1e-5), (loss_small, ref_small)

    # Larger f32 shape exercising batch tiling, the megacore split (on v7x) and
    # padded-tail masking (N not a multiple of the tile rows).
    N2, C2 = 2048, 8192
    logits2 = jax.random.normal(k3, (N2, C2), dtype=jnp.float32)
    labels2 = jax.random.randint(k4, (N2,), 0, C2, dtype=jnp.int32)
    loss_big = jax.block_until_ready(cross_entropy(logits2, labels2))
    lse2 = jax.scipy.special.logsumexp(logits2, axis=-1)
    ref_big = jnp.mean(lse2 - logits2[jnp.arange(N2), labels2])
    assert jnp.allclose(loss_big, ref_big, atol=2e-4, rtol=2e-4), (loss_big, ref_big)

    # bf16 logits exercise dtype-preserving DMA, 16-row sublane rounding and 'sum'.
    N3, C3 = 1536, 4096
    logits3 = jax.random.normal(k5, (N3, C3), dtype=jnp.float32).astype(jnp.bfloat16)
    labels3 = jax.random.randint(k6, (N3,), 0, C3, dtype=jnp.int32)
    loss_bf16 = jax.block_until_ready(cross_entropy(logits3, labels3, reduction="sum"))
    l3 = logits3.astype(jnp.float32)
    lse3 = jax.scipy.special.logsumexp(l3, axis=-1)
    ref_bf16 = jnp.sum(lse3 - l3[jnp.arange(N3), labels3])
    assert jnp.allclose(loss_bf16, ref_bf16, atol=5e-2, rtol=1e-4), (loss_bf16, ref_bf16)

    print("KERNEL_OK")
</pallas_src>

<mosaic_0001>
module attributes {stable_mosaic.version = 11 : i64} {
  func.func @kernel(%arg0: i32, %arg1: i32, %arg2: memref<8x32xf32, #tpu.memory_space<vmem>>, %arg3: memref<1x8x128xf32, #tpu.memory_space<vmem>>) attributes {dimension_semantics = [#tpu.dimension_semantics<parallel>, #tpu.dimension_semantics<arbitrary>], iteration_bounds = array<i64: 1, 1>, scalar_prefetch = 0 : i64, scratch_operands = 0 : i64, tpu.core_type = #tpu.core_type<tc>, window_params = [{transform_indices = @transform_0, window_bounds = array<i64: 8, 32>}, {transform_indices = @transform_1, window_bounds = array<i64: 1, 8, 128>}]} {
    %c0_i32 = arith.constant 0 : i32
    %0 = arith.cmpi eq, %arg1, %c0_i32 : i32
    %1 = arith.extui %0 : i1 to i32
    %c0_i32_0 = arith.constant 0 : i32
    %2 = arith.cmpi ne, %1, %c0_i32_0 : i32
    scf.if %2 {
      %cst = arith.constant 0.000000e+00 : f32
      %9 = vector.broadcast %cst : f32 to vector<1x8x128xf32>
      %c0 = arith.constant 0 : index
      %c0_3 = arith.constant 0 : index
      %c0_4 = arith.constant 0 : index
      %10 = vector.load %arg3[%c0, %c0_3, %c0_4] : memref<1x8x128xf32, #tpu.memory_space<vmem>>, vector<1x8x128xf32>
      tpu.vector_store %arg3[%c0, %c0_3, %c0_4], %9 {strides = array<i32>} : memref<1x8x128xf32, #tpu.memory_space<vmem>>, vector<1x8x128xf32>,
    } else {
    }
    %c1_i32 = arith.constant 1 : i32
    %3 = arith.muli %arg0, %c1_i32 : i32
    %4 = arith.addi %3, %arg1 : i32
    %c8_i32 = arith.constant 8 : i32
    %5 = arith.muli %4, %c8_i32 : i32
    %c8_i32_1 = arith.constant 8 : i32
    %6 = arith.cmpi slt, %5, %c8_i32_1 : i32
    %7 = arith.extui %6 : i1 to i32
    %c0_i32_2 = arith.constant 0 : i32
    %8 = arith.cmpi ne, %7, %c0_i32_2 : i32
    scf.if %8 {
      %c0 = arith.constant 0 : index
      %c0_3 = arith.constant 0 : index
      %9 = vector.load %arg2[%c0, %c0_3] : memref<8x32xf32, #tpu.memory_space<vmem>>, vector<8x32xf32>
      %cst = arith.constant dense<0xFF800000> : vector<8xf32>
      %10 = vector.multi_reduction <maximumf>, %9, %cst [1] : vector<8x32xf32> to vector<8xf32>
      %11 = vector.shape_cast %10 : vector<8xf32> to vector<8x1xf32>
      %12 = vector.broadcast %11 : vector<8x1xf32> to vector<8x32xf32>
      %13 = arith.subf %9, %12 : vector<8x32xf32>
      %14 = math.exp %13 : vector<8x32xf32>
      %cst_4 = arith.constant dense<0.000000e+00> : vector<8xf32>
      %15 = vector.multi_reduction <add>, %14, %cst_4 [1] : vector<8x32xf32> to vector<8xf32>
      %16 = vector.shape_cast %15 : vector<8xf32> to vector<8x1xf32>
      %17 = math.log %16 : vector<8x1xf32>
      %18 = arith.addf %11, %17 : vector<8x1xf32>
      %c8_i32_5 = arith.constant 8 : i32
      %19 = arith.muli %4, %c8_i32_5 : i32
      %20 = tpu.iota {dimensions = array<i32: 0>} : vector<8x1xi32>
      %21 = vector.broadcast %19 : i32 to vector<8x1xi32>
      %22 = arith.addi %21, %20 : vector<8x1xi32>
      %c8_i32_6 = arith.constant 8 : i32
      %23 = vector.broadcast %c8_i32_6 : i32 to vector<8x1xi32>
      %24 = arith.cmpi slt, %22, %23 : vector<8x1xi32>
      %cst_7 = arith.constant 0.000000e+00 : f32
      %25 = vector.broadcast %cst_7 : f32 to vector<8x1xf32>
      %26 = arith.select %24, %18, %25 : vector<8x1xi1>, vector<8x1xf32>
      %c0_8 = arith.constant 0 : index
      %c0_9 = arith.constant 0 : index
      %c0_10 = arith.constant 0 : index
      %27 = vector.load %arg3[%c0_8, %c0_9, %c0_10] : memref<1x8x128xf32, #tpu.memory_space<vmem>>, vector<1x8x128xf32>
      %28 = vector.shape_cast %26 : vector<8x1xf32> to vector<1x8x1xf32>
      %cst_11 = arith.constant dense<0.000000e+00> : vector<1xf32>
      %29 = vector.multi_reduction <add>, %28, %cst_11 [1, 2] : vector<1x8x1xf32> to vector<1xf32>
      %30 = vector.shape_cast %29 : vector<1xf32> to vector<1x1x1xf32>
      %31 = vector.extract %30[0, 0, 0] : f32 from vector<1x1x1xf32>
      %32 = vector.broadcast %31 : f32 to vector<1x8x128xf32>
      %33 = arith.addf %27, %32 : vector<1x8x128xf32>
      %c0_12 = arith.constant 0 : index
      %c0_13 = arith.constant 0 : index
      %c0_14 = arith.constant 0 : index
      %34 = vector.load %arg3[%c0_12, %c0_13, %c0_14] : memref<1x8x128xf32, #tpu.memory_space<vmem>>, vector<1x8x128xf32>
      tpu.vector_store %arg3[%c0_12, %c0_13, %c0_14], %33 {strides = array<i32>} : memref<1x8x128xf32, #tpu.memory_space<vmem>>, vector<1x8x128xf32>,
    } else {
    }
    return
  }
  func.func @transform_0(%arg0: i32, %arg1: i32) -> (i32, i32) {
    %c1_i32 = arith.constant 1 : i32
    %0 = arith.muli %arg0, %c1_i32 : i32
    %1 = arith.addi %0, %arg1 : i32
    %c0_i32 = arith.constant 0 : i32
    %2 = arith.minsi %1, %c0_i32 : i32
    %c0_i32_0 = arith.constant 0 : i32
    %c0_i32_1 = arith.constant 0 : i32
    return %2, %c0_i32_0 : i32, i32
  }
  func.func @transform_1(%arg0: i32, %arg1: i32) -> (i32, i32, i32) {
    %c0_i32 = arith.constant 0 : i32
    %c0_i32_0 = arith.constant 0 : i32
    %c0_i32_1 = arith.constant 0 : i32
    return %arg0, %c0_i32, %c0_i32_0 : i32, i32, i32
  }
}

</mosaic_0001>

<bundles_post_ra>
// kernel: tpu_custom_call.1
= control target key start
LH: loop header
LB: loop body
LE: loop exit
PB: predicated region body
PF: predicated region fallthrough
CT: control target
= control target key end

     0   :  { %6 = vsyncpa [#allocation3], 0  ;;  %s185_s0 = inlined_call_operand.hbm [shape: f32[8,32], index: 0, kind: input, shape index: {}]   ;;  %s186_s1 = inlined_call_operand.hbm [shape: f32[1,8,128], index: 1, kind: output, shape index: {}]  }
   0x1   :  { %7 = vsyncpa [#allocation4], 0  ;;  %s149_s6 = smov [#allocation2]   ;;  %s101_s10 = scalar_lea.hbm %s185_s0, 128 }
   0x2   :  { %s19_s7 = sshll.u32 %s149_s6, 4  ;;  %p102_p0 = scmp.ne.s32.totalorder %s185_s0, %s101_s10  ;;  %s20_s7 = int_to_ptr.vmem [resolvable:$true] %s19_s7 }
   0x3   :  { %p105_p1 = scmp.lt.u32.totalorder %s101_s10, %s185_s0 }
   0x5   :  { %p107_p2 = pnand %p105_p1, %p102_p0 }
   0x7   :  { %110 = shalt.err (!%p107_p2)
}
   0x8   :  { %s111_s15 = scalar_lea.vmem %s20_s7, 128  ;;  %p116_p4 = scmp.lt.s32.totalorder %s20_s7, %s20_s7 }
   0x9   :  { %p112_p3 = scmp.ne.s32.totalorder %s20_s7, %s111_s15  ;;  %p117_p5 = scmp.lt.s32.totalorder %s111_s15, %s111_s15 }
   0xb   :  { %p118_p6 = por %p117_p5, %p116_p4 }
   0xd   :  { %p119_p7 = pnand %p118_p6, %p112_p3 }
   0xf   :  { %122 = shalt.err (!%p119_p7)
}
  0x10   :  { %22 = dma.hbm_to_vmem [thread:$0]  %s185_s0, 128, %s20_s7, [#allocation3]  }
  0x11   :  { %145 = dma.done.wait [#allocation3], 128  }
  0x12   :  { %146 = vsyncadd [#allocation3], 4294967168  ;;  %vm41_vm0 = vcmask 261120   ;;  %v40_v0 = vld [vmem:[#allocation2] sm:$0xff]  ;;  %vm61_vm1 = vcmask 7168   ;;  %s150_s0 = smov [#allocation5]  }
  0x13   :  { %v42_v1 = vsel %vm41_vm0, %v40_v0, -inf  ;;  %s81_s18 = sshll.u32 %s150_s0, 4  ;;  %s82_s18 = int_to_ptr.vmem [resolvable:$true] %s81_s18 }
  0x14   :  { %43 = vmax.xlane.f32.xlu0 %v42_v1  ;;  %s123_s20 = scalar_lea.vmem %s82_s18, 128  ;;  %p128_p9 = scmp.lt.s32.totalorder %s82_s18, %s82_s18 }
  0x15   :  { %p124_p8 = scmp.ne.s32.totalorder %s82_s18, %s123_s20  ;;  %p129_p10 = scmp.lt.s32.totalorder %s123_s20, %s123_s20 }
  0x17   :  { %p130_p11 = por %p129_p10, %p128_p9 }
  0x19   :  { %p131_p12 = pnand %p130_p11, %p124_p8 }
  0xa1   :  { %v44_v2 = vpop.xlane.xlu0 %43 }
  0xa2   :  { %v45_v3 = vsub.f32 %v40_v0, %v44_v2 }
  0xa4   :  { %v46_v4 = vmul.f32 1.442695, %v45_v3 }
  0xa6   :  { %97 = vpow2.f32 %v46_v4 }
  0xb0   :  { %v98_v5 = vpop.eup %97 }
  0xb1   :  { %v48_v6 = vsel %vm41_vm0, %v98_v5, 0.0 }
  0xb2   :  { %49 = vadd.xlane.f32.xlu0 %v48_v6 }
 0x13f   :  { %v50_v7 = vpop.xlane.xlu0 %49 }
 0x140   :  { %99 = vlog2.f32 %v50_v7 }
 0x14a   :  { %v100_v8 = vpop.eup %99 }
 0x14b   :  { %v52_v9 = vmul.f32 0.6931472, %v100_v8 }
 0x14d   :  { %v53_v10 = vadd.f32 %v52_v9, %v44_v2 }
 0x14f   :  { %v62_v11 = vsel %vm61_vm1, %v53_v10, 0.0 }
 0x150   :  { %63 = vadd.xlane.f32.xlu1 %v62_v11 }
 0x1dd   :  { %v64_v12 = vpop.xlane.xlu1 %63 }
 0x1de   :  { %v65_v13 = vrot.slane %v64_v12, 4 }
 0x1e0   :  { %v66_v14 = vadd.f32 %v65_v13, %v64_v12 }
 0x1e2   :  { %v67_v15 = vrot.slane %v66_v14, 2 }
 0x1e4   :  { %v68_v16 = vadd.f32 %v67_v15, %v66_v14 }
 0x1e6   :  { %v69_v17 = vrot.slane %v68_v16, 1 }
 0x1e8   :  { %v70_v18 = vadd.f32 %v69_v17, %v68_v16 }
 0x1ea   :  { %92 = vpush %v70_v18 }
 0x21b   :  { %s93_s19 = spop %92 }
 0x21c   :  { %v72_v19 = vstv %s93_s19 }
 0x21d   :  { %74 = vst [vmem:[#allocation5] sm:$0xff] %v72_v19 }
 0x21e   :  { %134 = shalt.err (!%p131_p12)
}
 0x21f   :  { %s135_s23 = scalar_lea.hbm %s186_s1, 128 }
 0x220   :  { %p136_p13 = scmp.ne.s32.totalorder %s186_s1, %s135_s23  ;;  %p139_p0 = scmp.lt.u32.totalorder %s135_s23, %s186_s1 }
 0x222   :  { %p141_p1 = pnand %p139_p0, %p136_p13 }
 0x224   :  { %144 = shalt.err (!%p141_p1)
}
 0x225   :  { %84 = dma.vmem_to_hbm [thread:$0]  %s82_s18, 128, %s186_s1, [#allocation4]  }
 0x226   :  { %147 = dma.done.wait [#allocation4], 128  }
 0x227   :  { %148 = vsyncadd [#allocation4], 4294967168 }
 0x228   :  { %88 = vsyncpa [#allocation3], 1 }
 0x229   :  { %89 = vsyncpa [#allocation4], 1 }

</bundles_post_ra>
